<compile_context>
chip_gen: v5e
topology: v5e:2x2
jax: 0.10.0
libtpu: 0.0.40
codegen_flags: <defaults>
</compile_context>

<pallas_src>
import functools

import jax
import jax.numpy as jnp
from jax.experimental import pallas as pl
from jax.experimental.pallas import tpu as pltpu

LRELU_SLOPE = 0.01
LN_EPS = 1e-6


def _round_up(x, m):
    return ((x + m - 1) // m) * m


def _make_fused_kernel(layer_meta, dot_dtype):
    """layer_meta: tuple of (kind, n_real, n_pad); kind in {ln_lrelu, linear, linear_tanh}."""

    def kernel(x_ref, *rest):
        o_ref = rest[-1]
        refs = rest[:-1]
        h = x_ref[...]                     # (TB, F_pad), dot_dtype
        idx = 0
        for kind, n_real, n_pad in layer_meta:
            if kind == "ln_lrelu":
                w_ref, b_ref, g_ref, beta_ref = refs[idx:idx + 4]
                idx += 4
            else:
                w_ref, b_ref = refs[idx:idx + 2]
                idx += 2

            # MXU matmul, bf16 inputs / f32 accumulate. Bias add in f32.
            hd = jnp.dot(h.astype(dot_dtype), w_ref[...],
                         preferred_element_type=jnp.float32) + b_ref[...]

            if kind == "ln_lrelu":
                # Custom LayerNorm (ddpgv2 torch semantics: unbiased std, eps outside sqrt).
                # Padded columns of hd are exactly 0 (zero-padded W/b), so:
                #   mean_real = sum_pad(hd) / n_real
                #   diff over the padded columns == -mean
                # -> exact scalar variance correction, no per-element mask needed.
                mean = jnp.sum(hd, axis=-1, keepdims=True) * (1.0 / n_real)
                diff = hd - mean
                ss = jnp.sum(diff * diff, axis=-1, keepdims=True)
                if n_pad != n_real:
                    ss = ss - float(n_pad - n_real) * (mean * mean)
                var = ss * (1.0 / (n_real - 1))
                # Exact divide on a (TB, 1) column: negligible cost, tight f32 match.
                inv = 1.0 / (jnp.sqrt(var) + LN_EPS)
                y = (diff * inv) * g_ref[...] + beta_ref[...]
                # LeakyReLU(0.01): slope < 1 so max(y, slope*y) is exact.
                h = jnp.maximum(y, LRELU_SLOPE * y)
            elif kind == "linear":
                h = hd
            else:  # "linear_tanh"  -> Actor head
                h = jnp.tanh(hd)
        o_ref[...] = h.astype(o_ref.dtype)

    return kernel


def _pad_params(params, dot_dtype, feat_align):
    """Pad/cast every parameter ONCE (called from build_actor_forward, not per step)."""
    layers = []
    for (w, b), (g, beta) in zip(params["embed_fcs"], params["embed_norms"]):
        layers.append(("ln_lrelu", w, b, g, beta))
    w, b = params["embed_last_fc"]
    layers.append(("linear", w, b, None, None))
    w, b = params["w_out"]
    layers.append(("linear_tanh", w, b, None, None))

    F = layers[0][1].shape[0]
    A = layers[-1][1].shape[1]
    F_pad = _round_up(F, feat_align)
    dsize = jnp.dtype(dot_dtype).itemsize

    padded_args = []
    layer_meta = []
    weight_bytes = 0
    max_n_pad = F_pad
    k_pad = F_pad
    for kind, w, b, g, beta in layers:
        k_real, n_real = w.shape
        n_pad = _round_up(n_real, feat_align)
        max_n_pad = max(max_n_pad, n_pad)
        w_p = jnp.zeros((k_pad, n_pad), dot_dtype).at[:k_real, :n_real].set(
            w.astype(dot_dtype))
        b_p = jnp.zeros((1, n_pad), jnp.float32).at[0, :n_real].set(b)
        padded_args += [w_p, b_p]
        weight_bytes += k_pad * n_pad * dsize + n_pad * 4
        if kind == "ln_lrelu":
            g_p = jnp.zeros((1, n_pad), jnp.float32).at[0, :n_real].set(g)
            be_p = jnp.zeros((1, n_pad), jnp.float32).at[0, :n_real].set(beta)
            padded_args += [g_p, be_p]
            weight_bytes += 2 * n_pad * 4
        layer_meta.append((kind, n_real, n_pad))
        k_pad = n_pad

    A_pad = layer_meta[-1][2]
    return (tuple(padded_args), tuple(layer_meta), F, F_pad, A, A_pad,
            weight_bytes, max_n_pad)


def build_actor_forward(params, *, dot_dtype=jnp.bfloat16, batch_tile=128,
                        feat_align=128):
    """Pads parameters once and returns a jitted `forward(x) -> action` callable.

    feat_align=128 matches v5e's 4x128^2 MXU and is right for small ls; on v6e/v7x with
    ls > 128 pass feat_align=256 to better fill the 2x256^2 MXU.
    """
    (padded_args, layer_meta, F, F_pad, A, A_pad,
     weight_bytes, max_n_pad) = _pad_params(params, dot_dtype, feat_align)
    dsize = jnp.dtype(dot_dtype).itemsize

    kernel = _make_fused_kernel(layer_meta, dot_dtype)

    def _vmem_est(tb):
        # resident (single-buffered) weights + double-buffered x/out tiles + live f32 temps
        io = 2 * tb * F_pad * dsize + 2 * tb * A_pad * 4
        temps = 4 * tb * max_n_pad * 4
        return weight_bytes + io + temps

    @jax.jit
    def forward(x, *w_args):
        B = x.shape[0]
        # bf16 packs two rows per sublane -> TB multiple of 16; prefer >= 2 grid steps
        # (when B allows) so v7x's two TensorCores both get work.
        TB = min(batch_tile, max(16, _round_up((B + 1) // 2, 16)))
        # Cap TB so the VMEM budget stays well under v7x's 64 MiB physical VMEM.
        while TB > 16 and _vmem_est(TB) > (48 << 20):
            TB //= 2
        TB = max(16, _round_up(TB, 16))
        B_pad = _round_up(B, TB)

        # x padding lives inside the jitted graph (fuses; no per-call eager dispatches).
        x_p = jnp.zeros((B_pad, F_pad), dot_dtype).at[:B, :F].set(x.astype(dot_dtype))

        # Weights/bias/gamma/beta: constant index_map -> keep resident, single-buffered.
        resident = functools.partial(pl.BlockSpec, index_map=lambda i: (0, 0),
                                     pipeline_mode=pl.Buffered(1))
        in_specs = [pl.BlockSpec((TB, F_pad), lambda i: (i, 0))]
        in_specs += [resident(tuple(a.shape)) for a in w_args]

        vmem_limit = int(min(64 << 20, max(32 << 20, 2 * _vmem_est(TB))))

        out = pl.pallas_call(
            kernel,
            out_shape=jax.ShapeDtypeStruct((B_pad, A_pad), jnp.float32),
            grid=(B_pad // TB,),
            in_specs=in_specs,
            out_specs=pl.BlockSpec((TB, A_pad), lambda i: (i, 0)),
            compiler_params=pltpu.CompilerParams(
                dimension_semantics=("parallel",),
                vmem_limit_bytes=vmem_limit),
        )(x_p, *w_args)
        return out[:B, :A]

    def actor_apply(x):
        return forward(x, *padded_args)

    return actor_apply


def init_actor_params(key, state_dim, ls, action_dim, init=True):
    """nn.Linear default init U[-1/sqrt(in), 1/sqrt(in)]; weights stored as (in, out).
    init=True multiplies w_out weight/bias by 0.1 (as in Actor.__init__)."""
    params = {"embed_fcs": [], "embed_norms": []}
    in_size = state_dim
    for h in (ls, ls):
        key, kw, kb = jax.random.split(key, 3)
        bound = 1.0 / (in_size ** 0.5)
        w = jax.random.uniform(kw, (in_size, h), jnp.float32, -bound, bound)
        b = jax.random.uniform(kb, (h,), jnp.float32, -bound, bound)
        params["embed_fcs"].append((w, b))
        params["embed_norms"].append((jnp.ones((h,), jnp.float32),
                                      jnp.zeros((h,), jnp.float32)))
        in_size = h
    key, kw, kb = jax.random.split(key, 3)
    bound = 1.0 / (ls ** 0.5)
    params["embed_last_fc"] = (
        jax.random.uniform(kw, (ls, ls), jnp.float32, -bound, bound),
        jax.random.uniform(kb, (ls,), jnp.float32, -bound, bound))
    key, kw, kb = jax.random.split(key, 3)
    scale = 0.1 if init else 1.0
    params["w_out"] = (
        scale * jax.random.uniform(kw, (ls, action_dim), jnp.float32, -bound, bound),
        scale * jax.random.uniform(kb, (action_dim,), jnp.float32, -bound, bound))
    return params


def actor_forward_ref(params, x):
    """Pure-JAX f32 reference mirroring the PyTorch forward exactly."""
    h = x
    for (w, b), (g, beta) in zip(params["embed_fcs"], params["embed_norms"]):
        h = h @ w + b
        mean = jnp.mean(h, axis=-1, keepdims=True)
        diff = h - mean
        std = jnp.sqrt(jnp.sum(diff * diff, axis=-1, keepdims=True)
                       / (h.shape[-1] - 1))
        y = g * diff / (std + LN_EPS) + beta
        h = jnp.where(y >= 0, y, LRELU_SLOPE * y)
    w, b = params["embed_last_fc"]
    s_z = h @ w + b
    w, b = params["w_out"]
    return jnp.tanh(s_z @ w + b)


if __name__ == "__main__":
    key = jax.random.PRNGKey(0)
    batch, state_dim, ls, action_dim = 8, 16, 32, 4

    kx, kp = jax.random.split(key)
    x = jax.random.normal(kx, (batch, state_dim), jnp.float32)
    params = init_actor_params(kp, state_dim, ls, action_dim, init=True)

    actor = build_actor_forward(params)       # pads/caches parameters once
    out = jax.block_until_ready(actor(x))
    ref = jax.block_until_ready(actor_forward_ref(params, x))

    assert out.shape == (batch, action_dim), out.shape
    max_err = float(jnp.max(jnp.abs(out - ref)))
    # bf16 MXU inputs vs. pure-f32 reference (reciprocal is now exact) -> typically <~1e-3.
    assert max_err < 2e-2, f"max err {max_err}"
    print("KERNEL_OK")
</pallas_src>

<mosaic_0001>
module attributes {stable_mosaic.version = 11 : i64} {
  func.func @kernel(%arg0: i32, %arg1: memref<16x128xbf16, #tpu.memory_space<vmem>>, %arg2: memref<128x128xbf16, #tpu.memory_space<vmem>>, %arg3: memref<1x128xf32, #tpu.memory_space<vmem>>, %arg4: memref<1x128xf32, #tpu.memory_space<vmem>>, %arg5: memref<1x128xf32, #tpu.memory_space<vmem>>, %arg6: memref<128x128xbf16, #tpu.memory_space<vmem>>, %arg7: memref<1x128xf32, #tpu.memory_space<vmem>>, %arg8: memref<1x128xf32, #tpu.memory_space<vmem>>, %arg9: memref<1x128xf32, #tpu.memory_space<vmem>>, %arg10: memref<128x128xbf16, #tpu.memory_space<vmem>>, %arg11: memref<1x128xf32, #tpu.memory_space<vmem>>, %arg12: memref<128x128xbf16, #tpu.memory_space<vmem>>, %arg13: memref<1x128xf32, #tpu.memory_space<vmem>>, %arg14: memref<16x128xf32, #tpu.memory_space<vmem>>) attributes {dimension_semantics = [#tpu.dimension_semantics<parallel>], iteration_bounds = array<i64: 1>, scalar_prefetch = 0 : i64, scratch_operands = 0 : i64, tpu.core_type = #tpu.core_type<tc>, window_params = [{transform_indices = @transform_0, window_bounds = array<i64: 16, 128>}, {pipeline_mode = #tpu.pipeline_mode<synchronous>, transform_indices = @transform_1, window_bounds = array<i64: 128, 128>}, {pipeline_mode = #tpu.pipeline_mode<synchronous>, transform_indices = @transform_2, window_bounds = array<i64: 1, 128>}, {pipeline_mode = #tpu.pipeline_mode<synchronous>, transform_indices = @transform_3, window_bounds = array<i64: 1, 128>}, {pipeline_mode = #tpu.pipeline_mode<synchronous>, transform_indices = @transform_4, window_bounds = array<i64: 1, 128>}, {pipeline_mode = #tpu.pipeline_mode<synchronous>, transform_indices = @transform_5, window_bounds = array<i64: 128, 128>}, {pipeline_mode = #tpu.pipeline_mode<synchronous>, transform_indices = @transform_6, window_bounds = array<i64: 1, 128>}, {pipeline_mode = #tpu.pipeline_mode<synchronous>, transform_indices = @transform_7, window_bounds = array<i64: 1, 128>}, {pipeline_mode = #tpu.pipeline_mode<synchronous>, transform_indices = @transform_8, window_bounds = array<i64: 1, 128>}, {pipeline_mode = #tpu.pipeline_mode<synchronous>, transform_indices = @transform_9, window_bounds = array<i64: 128, 128>}, {pipeline_mode = #tpu.pipeline_mode<synchronous>, transform_indices = @transform_10, window_bounds = array<i64: 1, 128>}, {pipeline_mode = #tpu.pipeline_mode<synchronous>, transform_indices = @transform_11, window_bounds = array<i64: 128, 128>}, {pipeline_mode = #tpu.pipeline_mode<synchronous>, transform_indices = @transform_12, window_bounds = array<i64: 1, 128>}, {transform_indices = @transform_13, window_bounds = array<i64: 16, 128>}]} {
    %c0 = arith.constant 0 : index
    %c0_0 = arith.constant 0 : index
    %0 = vector.load %arg1[%c0, %c0_0] : memref<16x128xbf16, #tpu.memory_space<vmem>>, vector<16x128xbf16>
    %c0_1 = arith.constant 0 : index
    %c0_2 = arith.constant 0 : index
    %1 = vector.load %arg2[%c0_1, %c0_2] : memref<128x128xbf16, #tpu.memory_space<vmem>>, vector<128x128xbf16>
    %cst = arith.constant dense<0.000000e+00> : vector<16x128xf32>
    %2 = tpu.matmul %0, %1, %cst {dimension_numbers = #tpu.dot_dimension_numbers<[1], [0], [0], [1], [0, 0, 1, 1], [], []>} : vector<16x128xbf16>, vector<128x128xbf16>, vector<16x128xf32> -> vector<16x128xf32>
    %c0_3 = arith.constant 0 : index
    %c0_4 = arith.constant 0 : index
    %3 = vector.load %arg3[%c0_3, %c0_4] : memref<1x128xf32, #tpu.memory_space<vmem>>, vector<1x128xf32>
    %4 = vector.broadcast %3 : vector<1x128xf32> to vector<16x128xf32>
    %5 = arith.addf %2, %4 : vector<16x128xf32>
    %cst_5 = arith.constant dense<0.000000e+00> : vector<16xf32>
    %6 = vector.multi_reduction <add>, %5, %cst_5 [1] : vector<16x128xf32> to vector<16xf32>
    %7 = vector.shape_cast %6 : vector<16xf32> to vector<16x1xf32>
    %cst_6 = arith.constant 3.125000e-02 : f32
    %8 = vector.broadcast %cst_6 : f32 to vector<16x1xf32>
    %9 = arith.mulf %7, %8 : vector<16x1xf32>
    %10 = vector.broadcast %9 : vector<16x1xf32> to vector<16x128xf32>
    %11 = arith.subf %5, %10 : vector<16x128xf32>
    %12 = arith.mulf %11, %11 : vector<16x128xf32>
    %cst_7 = arith.constant dense<0.000000e+00> : vector<16xf32>
    %13 = vector.multi_reduction <add>, %12, %cst_7 [1] : vector<16x128xf32> to vector<16xf32>
    %14 = vector.shape_cast %13 : vector<16xf32> to vector<16x1xf32>
    %15 = arith.mulf %9, %9 : vector<16x1xf32>
    %cst_8 = arith.constant 9.600000e+01 : f32
    %16 = vector.broadcast %cst_8 : f32 to vector<16x1xf32>
    %17 = arith.mulf %16, %15 : vector<16x1xf32>
    %18 = arith.subf %14, %17 : vector<16x1xf32>
    %cst_9 = arith.constant 0.0322580636 : f32
    %19 = vector.broadcast %cst_9 : f32 to vector<16x1xf32>
    %20 = arith.mulf %18, %19 : vector<16x1xf32>
    %21 = math.sqrt %20 : vector<16x1xf32>
    %cst_10 = arith.constant 9.99999997E-7 : f32
    %22 = vector.broadcast %cst_10 : f32 to vector<16x1xf32>
    %23 = arith.addf %21, %22 : vector<16x1xf32>
    %cst_11 = arith.constant 1.000000e+00 : f32
    %24 = vector.broadcast %cst_11 : f32 to vector<16x1xf32>
    %25 = arith.divf %24, %23 : vector<16x1xf32>
    %26 = vector.broadcast %25 : vector<16x1xf32> to vector<16x128xf32>
    %27 = arith.mulf %11, %26 : vector<16x128xf32>
    %c0_12 = arith.constant 0 : index
    %c0_13 = arith.constant 0 : index
    %28 = vector.load %arg4[%c0_12, %c0_13] : memref<1x128xf32, #tpu.memory_space<vmem>>, vector<1x128xf32>
    %29 = vector.broadcast %28 : vector<1x128xf32> to vector<16x128xf32>
    %30 = arith.mulf %27, %29 : vector<16x128xf32>
    %c0_14 = arith.constant 0 : index
    %c0_15 = arith.constant 0 : index
    %31 = vector.load %arg5[%c0_14, %c0_15] : memref<1x128xf32, #tpu.memory_space<vmem>>, vector<1x128xf32>
    %32 = vector.broadcast %31 : vector<1x128xf32> to vector<16x128xf32>
    %33 = arith.addf %30, %32 : vector<16x128xf32>
    %cst_16 = arith.constant 0.00999999977 : f32
    %34 = vector.broadcast %cst_16 : f32 to vector<16x128xf32>
    %35 = arith.mulf %34, %33 : vector<16x128xf32>
    %36 = arith.maximumf %33, %35 : vector<16x128xf32>
    %37 = arith.truncf %36 : vector<16x128xf32> to vector<16x128xbf16>
    %c0_17 = arith.constant 0 : index
    %c0_18 = arith.constant 0 : index
    %38 = vector.load %arg6[%c0_17, %c0_18] : memref<128x128xbf16, #tpu.memory_space<vmem>>, vector<128x128xbf16>
    %cst_19 = arith.constant dense<0.000000e+00> : vector<16x128xf32>
    %39 = tpu.matmul %37, %38, %cst_19 {dimension_numbers = #tpu.dot_dimension_numbers<[1], [0], [0], [1], [0, 0, 1, 1], [], []>} : vector<16x128xbf16>, vector<128x128xbf16>, vector<16x128xf32> -> vector<16x128xf32>
    %c0_20 = arith.constant 0 : index
    %c0_21 = arith.constant 0 : index
    %40 = vector.load %arg7[%c0_20, %c0_21] : memref<1x128xf32, #tpu.memory_space<vmem>>, vector<1x128xf32>
    %41 = vector.broadcast %40 : vector<1x128xf32> to vector<16x128xf32>
    %42 = arith.addf %39, %41 : vector<16x128xf32>
    %cst_22 = arith.constant dense<0.000000e+00> : vector<16xf32>
    %43 = vector.multi_reduction <add>, %42, %cst_22 [1] : vector<16x128xf32> to vector<16xf32>
    %44 = vector.shape_cast %43 : vector<16xf32> to vector<16x1xf32>
    %cst_23 = arith.constant 3.125000e-02 : f32
    %45 = vector.broadcast %cst_23 : f32 to vector<16x1xf32>
    %46 = arith.mulf %44, %45 : vector<16x1xf32>
    %47 = vector.broadcast %46 : vector<16x1xf32> to vector<16x128xf32>
    %48 = arith.subf %42, %47 : vector<16x128xf32>
    %49 = arith.mulf %48, %48 : vector<16x128xf32>
    %cst_24 = arith.constant dense<0.000000e+00> : vector<16xf32>
    %50 = vector.multi_reduction <add>, %49, %cst_24 [1] : vector<16x128xf32> to vector<16xf32>
    %51 = vector.shape_cast %50 : vector<16xf32> to vector<16x1xf32>
    %52 = arith.mulf %46, %46 : vector<16x1xf32>
    %cst_25 = arith.constant 9.600000e+01 : f32
    %53 = vector.broadcast %cst_25 : f32 to vector<16x1xf32>
    %54 = arith.mulf %53, %52 : vector<16x1xf32>
    %55 = arith.subf %51, %54 : vector<16x1xf32>
    %cst_26 = arith.constant 0.0322580636 : f32
    %56 = vector.broadcast %cst_26 : f32 to vector<16x1xf32>
    %57 = arith.mulf %55, %56 : vector<16x1xf32>
    %58 = math.sqrt %57 : vector<16x1xf32>
    %cst_27 = arith.constant 9.99999997E-7 : f32
    %59 = vector.broadcast %cst_27 : f32 to vector<16x1xf32>
    %60 = arith.addf %58, %59 : vector<16x1xf32>
    %cst_28 = arith.constant 1.000000e+00 : f32
    %61 = vector.broadcast %cst_28 : f32 to vector<16x1xf32>
    %62 = arith.divf %61, %60 : vector<16x1xf32>
    %63 = vector.broadcast %62 : vector<16x1xf32> to vector<16x128xf32>
    %64 = arith.mulf %48, %63 : vector<16x128xf32>
    %c0_29 = arith.constant 0 : index
    %c0_30 = arith.constant 0 : index
    %65 = vector.load %arg8[%c0_29, %c0_30] : memref<1x128xf32, #tpu.memory_space<vmem>>, vector<1x128xf32>
    %66 = vector.broadcast %65 : vector<1x128xf32> to vector<16x128xf32>
    %67 = arith.mulf %64, %66 : vector<16x128xf32>
    %c0_31 = arith.constant 0 : index
    %c0_32 = arith.constant 0 : index
    %68 = vector.load %arg9[%c0_31, %c0_32] : memref<1x128xf32, #tpu.memory_space<vmem>>, vector<1x128xf32>
    %69 = vector.broadcast %68 : vector<1x128xf32> to vector<16x128xf32>
    %70 = arith.addf %67, %69 : vector<16x128xf32>
    %cst_33 = arith.constant 0.00999999977 : f32
    %71 = vector.broadcast %cst_33 : f32 to vector<16x128xf32>
    %72 = arith.mulf %71, %70 : vector<16x128xf32>
    %73 = arith.maximumf %70, %72 : vector<16x128xf32>
    %74 = arith.truncf %73 : vector<16x128xf32> to vector<16x128xbf16>
    %c0_34 = arith.constant 0 : index
    %c0_35 = arith.constant 0 : index
    %75 = vector.load %arg10[%c0_34, %c0_35] : memref<128x128xbf16, #tpu.memory_space<vmem>>, vector<128x128xbf16>
    %cst_36 = arith.constant dense<0.000000e+00> : vector<16x128xf32>
    %76 = tpu.matmul %74, %75, %cst_36 {dimension_numbers = #tpu.dot_dimension_numbers<[1], [0], [0], [1], [0, 0, 1, 1], [], []>} : vector<16x128xbf16>, vector<128x128xbf16>, vector<16x128xf32> -> vector<16x128xf32>
    %c0_37 = arith.constant 0 : index
    %c0_38 = arith.constant 0 : index
    %77 = vector.load %arg11[%c0_37, %c0_38] : memref<1x128xf32, #tpu.memory_space<vmem>>, vector<1x128xf32>
    %78 = vector.broadcast %77 : vector<1x128xf32> to vector<16x128xf32>
    %79 = arith.addf %76, %78 : vector<16x128xf32>
    %80 = arith.truncf %79 : vector<16x128xf32> to vector<16x128xbf16>
    %c0_39 = arith.constant 0 : index
    %c0_40 = arith.constant 0 : index
    %81 = vector.load %arg12[%c0_39, %c0_40] : memref<128x128xbf16, #tpu.memory_space<vmem>>, vector<128x128xbf16>
    %cst_41 = arith.constant dense<0.000000e+00> : vector<16x128xf32>
    %82 = tpu.matmul %80, %81, %cst_41 {dimension_numbers = #tpu.dot_dimension_numbers<[1], [0], [0], [1], [0, 0, 1, 1], [], []>} : vector<16x128xbf16>, vector<128x128xbf16>, vector<16x128xf32> -> vector<16x128xf32>
    %c0_42 = arith.constant 0 : index
    %c0_43 = arith.constant 0 : index
    %83 = vector.load %arg13[%c0_42, %c0_43] : memref<1x128xf32, #tpu.memory_space<vmem>>, vector<1x128xf32>
    %84 = vector.broadcast %83 : vector<1x128xf32> to vector<16x128xf32>
    %85 = arith.addf %82, %84 : vector<16x128xf32>
    %86 = math.tanh %85 : vector<16x128xf32>
    %c0_44 = arith.constant 0 : index
    %c0_45 = arith.constant 0 : index
    %87 = vector.load %arg14[%c0_44, %c0_45] : memref<16x128xf32, #tpu.memory_space<vmem>>, vector<16x128xf32>
    tpu.vector_store %arg14[%c0_44, %c0_45], %86 {strides = array<i32>} : memref<16x128xf32, #tpu.memory_space<vmem>>, vector<16x128xf32>,
    return
  }
  func.func @transform_0(%arg0: i32) -> (i32, i32) {
    %c0_i32 = arith.constant 0 : i32
    %c0_i32_0 = arith.constant 0 : i32
    return %arg0, %c0_i32 : i32, i32
  }
  func.func @transform_1(%arg0: i32) -> (i32, i32) {
    %c0_i32 = arith.constant 0 : i32
    %c0_i32_0 = arith.constant 0 : i32
    %c0_i32_1 = arith.constant 0 : i32
    return %c0_i32, %c0_i32_0 : i32, i32
  }
  func.func @transform_2(%arg0: i32) -> (i32, i32) {
    %c0_i32 = arith.constant 0 : i32
    %c0_i32_0 = arith.constant 0 : i32
    %c0_i32_1 = arith.constant 0 : i32
    return %c0_i32, %c0_i32_0 : i32, i32
  }
  func.func @transform_3(%arg0: i32) -> (i32, i32) {
    %c0_i32 = arith.constant 0 : i32
    %c0_i32_0 = arith.constant 0 : i32
    %c0_i32_1 = arith.constant 0 : i32
    return %c0_i32, %c0_i32_0 : i32, i32
  }
  func.func @transform_4(%arg0: i32) -> (i32, i32) {
    %c0_i32 = arith.constant 0 : i32
    %c0_i32_0 = arith.constant 0 : i32
    %c0_i32_1 = arith.constant 0 : i32
    return %c0_i32, %c0_i32_0 : i32, i32
  }
  func.func @transform_5(%arg0: i32) -> (i32, i32) {
    %c0_i32 = arith.constant 0 : i32
    %c0_i32_0 = arith.constant 0 : i32
    %c0_i32_1 = arith.constant 0 : i32
    return %c0_i32, %c0_i32_0 : i32, i32
  }
  func.func @transform_6(%arg0: i32) -> (i32, i32) {
    %c0_i32 = arith.constant 0 : i32
    %c0_i32_0 = arith.constant 0 : i32
    %c0_i32_1 = arith.constant 0 : i32
    return %c0_i32, %c0_i32_0 : i32, i32
  }
  func.func @transform_7(%arg0: i32) -> (i32, i32) {
    %c0_i32 = arith.constant 0 : i32
    %c0_i32_0 = arith.constant 0 : i32
    %c0_i32_1 = arith.constant 0 : i32
    return %c0_i32, %c0_i32_0 : i32, i32
  }
  func.func @transform_8(%arg0: i32) -> (i32, i32) {
    %c0_i32 = arith.constant 0 : i32
    %c0_i32_0 = arith.constant 0 : i32
    %c0_i32_1 = arith.constant 0 : i32
    return %c0_i32, %c0_i32_0 : i32, i32
  }
  func.func @transform_9(%arg0: i32) -> (i32, i32) {
    %c0_i32 = arith.constant 0 : i32
    %c0_i32_0 = arith.constant 0 : i32
    %c0_i32_1 = arith.constant 0 : i32
    return %c0_i32, %c0_i32_0 : i32, i32
  }
  func.func @transform_10(%arg0: i32) -> (i32, i32) {
    %c0_i32 = arith.constant 0 : i32
    %c0_i32_0 = arith.constant 0 : i32
    %c0_i32_1 = arith.constant 0 : i32
    return %c0_i32, %c0_i32_0 : i32, i32
  }
  func.func @transform_11(%arg0: i32) -> (i32, i32) {
    %c0_i32 = arith.constant 0 : i32
    %c0_i32_0 = arith.constant 0 : i32
    %c0_i32_1 = arith.constant 0 : i32
    return %c0_i32, %c0_i32_0 : i32, i32
  }
  func.func @transform_12(%arg0: i32) -> (i32, i32) {
    %c0_i32 = arith.constant 0 : i32
    %c0_i32_0 = arith.constant 0 : i32
    %c0_i32_1 = arith.constant 0 : i32
    return %c0_i32, %c0_i32_0 : i32, i32
  }
  func.func @transform_13(%arg0: i32) -> (i32, i32) {
    %c0_i32 = arith.constant 0 : i32
    %c0_i32_0 = arith.constant 0 : i32
    return %arg0, %c0_i32 : i32, i32
  }
}

</mosaic_0001>

<bundles_post_ra>
// kernel: forward.1
= control target key start
LH: loop header
LB: loop body
LE: loop exit
PB: predicated region body
PF: predicated region fallthrough
CT: control target
= control target key end

     0   :  { %18 = vsyncpa [#allocation3], 0  ;;  %s1091_s0 = inlined_call_operand.vmem [shape: bf16[16,128], index: 0, kind: input, shape index: {}]   ;;  %s1092_s1 = inlined_call_operand.hbm [shape: bf16[128,128], index: 1, kind: input, shape index: {}]   ;;  %s1093_s2 = inlined_call_operand.vmem [shape: f32[1,128], index: 2, kind: input, shape index: {}]   ;;  %s1094_s3 = inlined_call_operand.vmem [shape: f32[1,128], index: 3, kind: input, shape index: {}]   ;;  %s1095_s4 = inlined_call_operand.vmem [shape: f32[1,128], index: 4, kind: input, shape index: {}]   ;;  %s1096_s5 = inlined_call_operand.hbm [shape: bf16[128,128], index: 5, kind: input, shape index: {}]   ;;  %s1097_s6 = inlined_call_operand.vmem [shape: f32[1,128], index: 6, kind: input, shape index: {}]   ;;  %s1098_s7 = inlined_call_operand.vmem [shape: f32[1,128], index: 7, kind: input, shape index: {}]   ;;  %s1099_s8 = inlined_call_operand.vmem [shape: f32[1,128], index: 8, kind: input, shape index: {}]   ;;  %s1100_s9 = inlined_call_operand.hbm [shape: bf16[128,128], index: 9, kind: input, shape index: {}]   ;;  %s1101_s10 = inlined_call_operand.vmem [shape: f32[1,128], index: 10, kind: input, shape index: {}]   ;;  %s1102_s11 = inlined_call_operand.hbm [shape: bf16[128,128], index: 11, kind: input, shape index: {}]   ;;  %s1103_s12 = inlined_call_operand.vmem [shape: f32[1,128], index: 12, kind: input, shape index: {}]   ;;  %s1104_s13 = inlined_call_operand.vmem [shape: f32[16,128], index: 13, kind: output, shape index: {}]  }
   0x1   :  { %19 = vsyncpa [#allocation5], 0 }
   0x2   :  { %20 = vsyncpa [#allocation8], 0  ;;  %s46_s27 = sshll.u32 %s1096_s5, 4  ;;  %s950_s28 = smov [#allocation4]   ;;  %s47_s27 = int_to_ptr.hbm [resolvable:$true] %s46_s27 }
   0x3   :  { %s48_s29 = sshll.u32 %s950_s28, 4  ;;  %s27_s15 = sshll.u32 %s1092_s1, 4  ;;  %s49_s29 = int_to_ptr.vmem [resolvable:$true] %s48_s29  ;;  %s28_s15 = int_to_ptr.hbm [resolvable:$true] %s27_s15 }
   0x4   :  { %s951_s16 = smov 64   ;;  %s952_s17 = smov 4  }
   0x5   :  { %54 = dma.hbm_to_vmem [thread:$0]  %s47_s27, 1024, %s49_s29, [#allocation5], %s951_s16, %s951_s16, %s952_s17  }
   0x6   :  { %s953_s18 = smov [#allocation2]   ;;  %s65_s22 = sshll.u32 %s1100_s9, 4  ;;  %s66_s22 = int_to_ptr.hbm [resolvable:$true] %s65_s22 }
   0x7   :  { %s29_s19 = sshll.u32 %s953_s18, 4  ;;  %s80_s24 = sshll.u32 %s1102_s11, 4  ;;  %s30_s19 = int_to_ptr.vmem [resolvable:$true] %s29_s19  ;;  %s81_s24 = int_to_ptr.hbm [resolvable:$true] %s80_s24 }
   0x8   :  { %35 = dma.hbm_to_vmem [thread:$0]  %s28_s15, 1024, %s30_s19, [#allocation3], %s951_s16, %s951_s16, %s952_s17  }
   0x9   :  { %s954_s25 = smov [#allocation6]   ;;  %s955_s1 = smov [#allocation7]  }
   0xa   :  { %s67_s26 = sshll.u32 %s954_s25, 4  ;;  %s82_s27 = sshll.u32 %s955_s1, 4  ;;  %s68_s26 = int_to_ptr.vmem [resolvable:$true] %s67_s26  ;;  %s83_s27 = int_to_ptr.vmem [resolvable:$true] %s82_s27 }
   0xb   :  { %73 = dma.hbm_to_vmem [thread:$0]  %s66_s22, 1024, %s68_s26, [#allocation5], %s951_s16, %s951_s16, %s952_s17  }
   0xc   :  { %88 = dma.hbm_to_vmem [thread:$0]  %s81_s24, 1024, %s83_s27, [#allocation8], %s951_s16, %s951_s16, %s952_s17  }
   0xd   :  { %944 = dma.done.wait [#allocation3], 1024  }
   0xe   :  { %945 = vsyncadd [#allocation3], 4294966272 }
   0xf   :  { %946 = dma.done.wait [#allocation5], 2048  }
  0x10   :  { %947 = vsyncadd [#allocation5], 4294965248 }
  0x11   :  { %948 = dma.done.wait [#allocation8], 1024  }
  0x12   :  { %949 = vsyncadd [#allocation8], 4294966272  ;;  %v789_v0 = vld [vmem:[#allocation2 + $0x38] sm:$0xff]  ;;  %v788_v1 = vld [vmem:[#allocation2 + $0x30] sm:$0xff] }
  0x13   :  { %183 = vmatpush.bf16.msra.mxu0 %v789_v0  ;;  %v787_v2 = vld [vmem:[#allocation2 + $0x28] sm:$0xff]  ;;  %v786_v3 = vld [vmem:[#allocation2 + $0x20] sm:$0xff]  ;;  %v785_v4 = vld [vmem:[#allocation2 + $0x18] sm:$0xff] }
  0x14   :  { %v784_v5 = vld [vmem:[#allocation2 + $0x10] sm:$0xff]  ;;  %v783_v6 = vld [vmem:[#allocation2 + $0x8] sm:$0xff]  ;;  %v782_v7 = vld [vmem:[#allocation2] sm:$0xff] }
  0x15   :  { %v781_v8 = vld [vmem:[%s1091_s0] sm:$0xff]  ;;  %v797_v25 = vld [vmem:[#allocation4 + $0x38] sm:$0xff]  ;;  %v796_v27 = vld [vmem:[#allocation4 + $0x30] sm:$0xff] }
  0x16   :  { %v820_v9 = vld [vmem:[%s1093_s2] ss:$0 sm:$0xff]  ;;  %362 = vmatpush.bf16.msra.mxu1 %v797_v25  ;;  %v795_v30 = vld [vmem:[#allocation4 + $0x28] sm:$0xff]  ;;  %v793_v39 = vld [vmem:[#allocation4 + $0x18] sm:$0xff] }
  0x17   :  { %184 = vmatpush.bf16.msra.mxu0 %v788_v1  ;;  %v794_v34 = vld [vmem:[#allocation4 + $0x20] sm:$0xff]  ;;  %v792_v42 = vld [vmem:[#allocation4 + $0x10] sm:$0xff]  ;;  %v791_v48 = vld [vmem:[#allocation4 + $0x8] sm:$0xff] }
  0x18   :  { %v790_v54 = vld [vmem:[#allocation4] sm:$0xff] }
  0x1a   :  { %363 = vmatpush.bf16.msra.mxu1 %v796_v27 }
  0x1b   :  { %185 = vmatpush.bf16.msra.mxu0 %v787_v2 }
  0x1e   :  { %364 = vmatpush.bf16.msra.mxu1 %v795_v30 }
  0x1f   :  { %186 = vmatpush.bf16.msra.mxu0 %v786_v3 }
  0x22   :  { %365 = vmatpush.bf16.msra.mxu1 %v794_v34 }
  0x23   :  { %187 = vmatpush.bf16.msra.mxu0 %v785_v4 }
  0x26   :  { %366 = vmatpush.bf16.msra.mxu1 %v793_v39 }
  0x27   :  { %188 = vmatpush.bf16.msra.mxu0 %v784_v5 }
  0x2a   :  { %367 = vmatpush.bf16.msra.mxu1 %v792_v42 }
  0x2b   :  { %189 = vmatpush.bf16.msra.mxu0 %v783_v6 }
  0x2e   :  { %368 = vmatpush.bf16.msra.mxu1 %v791_v48 }
  0x2f   :  { %190 = vmatpush.bf16.msra.mxu0 %v782_v7 }
  0x32   :  { %191 = vmatmul.bf16.vlgmr.msra.gmra.mxu0 %v781_v8  ;;  %369 = vmatpush.bf16.msra.mxu1 %v790_v54 }
  0xaf   :  { %v192_v10 = vpop.f32.mrf.mxu0 }
  0xb0   :  { %v193_v11 = vadd.f32 %v820_v9, %v192_v10 }
  0xb2   :  { %197 = vadd.xlane.f32.xlu0 %v193_v11 }
  0xb7   :  { %v194_v12 = vpop.f32.mrf.mxu0 }
  0xb8   :  { %v195_v13 = vadd.f32 %v820_v9, %v194_v12  ;;  %v821_v12 = vld [vmem:[%s1094_s3] ss:$0 sm:$0xff] }
  0xba   :  { %199 = vadd.xlane.f32.xlu0 %v195_v13 }
 0x125   :  { %v198_v14 = vpop.xlane.xlu0 %197 }
 0x126   :  { %v201_v15 = vmul.f32 0.03125, %v198_v14 }
 0x128   :  { %v1044_v16 = vsub.f32 %v193_v11, %v201_v15  ;;  %v211_v22 = vmul.f32 %v201_v15, %v201_v15 }
 0x12a   :  { %v205_v17 = vmul.f32 %v1044_v16, %v1044_v16  ;;  %v213_v23 = vmul.f32 96.0, %v211_v22 }
 0x12c   :  { %207 = vadd.xlane.f32.xlu1 %v205_v17 }
 0x12d   :  { %v200_v18 = vpop.xlane.xlu0 %199 }
 0x12e   :  { %v202_v19 = vmul.f32 0.03125, %v200_v18 }
 0x130   :  { %v1048_v20 = vsub.f32 %v195_v13, %v202_v19  ;;  %v212_v28 = vmul.f32 %v202_v19, %v202_v19  ;;  %v822_v19 = vld [vmem:[%s1095_s4] ss:$0 sm:$0xff] }
 0x132   :  { %v206_v21 = vmul.f32 %v1048_v20, %v1048_v20  ;;  %v214_v31 = vmul.f32 96.0, %v212_v28 }
 0x134   :  { %209 = vadd.xlane.f32.xlu1 %v206_v21 }
 0x19f   :  { %v208_v24 = vpop.xlane.xlu1 %207 }
 0x1a0   :  { %v215_v26 = vsub.f32 %v208_v24, %v213_v23 }
 0x1a2   :  { %v217_v29 = vmul.f32 0.032258064, %v215_v26 }
 0x1a4   :  { %828 = vrsqrt.f32 %v217_v29  ;;  %vm226_vm0 = vcmp.eq.f32.partialorder %v217_v29, inf  ;;  %v229_v49 = vand.u32 2147483648, %v217_v29  ;;  %vm228_vm1 = vcmp.eq.f32.partialorder %v217_v29, 0.0 }
 0x1a7   :  { %v210_v32 = vpop.xlane.xlu1 %209 }
 0x1a8   :  { %v216_v33 = vsub.f32 %v210_v32, %v214_v31  ;;  %v823_v32 = vld [vmem:[%s1097_s6] ss:$0 sm:$0xff] }
 0x1aa   :  { %v829_v35 = vpop.eup %828  ;;  %v218_v36 = vmul.f32 0.032258064, %v216_v33 }
 0x1ab   :  { %v220_v37 = vmul.f32 %v829_v35, %v217_v29 }
 0x1ac   :  { %830 = vrsqrt.f32 %v218_v36  ;;  %vm238_vm2 = vcmp.eq.f32.partialorder %v218_v36, inf  ;;  %v241_v58 = vand.u32 2147483648, %v218_v36  ;;  %vm240_vm3 = vcmp.eq.f32.partialorder %v218_v36, 0.0 }
 0x1ad   :  { %v221_v38 = vmul.f32 %v829_v35, %v220_v37 }
 0x1af   :  { %v222_v40 = vmul.f32 0.5, %v221_v38 }
 0x1b1   :  { %v223_v41 = vsub.f32 1.5, %v222_v40 }
 0x1b2   :  { %v831_v43 = vpop.eup %830 }
 0x1b3   :  { %v224_v44 = vmul.f32 %v829_v35, %v223_v41  ;;  %v232_v45 = vmul.f32 %v831_v43, %v218_v36 }
 0x1b5   :  { %v225_v46 = vmul.f32 %v224_v44, %v217_v29  ;;  %v233_v47 = vmul.f32 %v831_v43, %v232_v45 }
 0x1b7   :  { %v227_v50 = vsel %vm226_vm0, %v217_v29, %v225_v46  ;;  %v234_v51 = vmul.f32 0.5, %v233_v47  ;;  %v805_v47 = vld [vmem:[#allocation6 + $0x38] sm:$0xff] }
 0x1b8   :  { %v230_v52 = vsel %vm228_vm1, %v229_v49, %v227_v50  ;;  %541 = vmatpush.bf16.msra.mxu2 %v805_v47  ;;  %v804_v49 = vld [vmem:[#allocation6 + $0x30] sm:$0xff]  ;;  %v825_v47 = vld [vmem:[%s1099_s8] ss:$0 sm:$0xff] }
 0x1b9   :  { %v235_v53 = vsub.f32 1.5, %v234_v51  ;;  %v243_v55 = vadd.f32 1e-06, %v230_v52  ;;  %v803_v52 = vld [vmem:[#allocation6 + $0x28] sm:$0xff] }
 0x1bb   :  { %v236_v56 = vmul.f32 %v831_v43, %v235_v53  ;;  %832 = vrcp.f32 %v243_v55  ;;  %v256_v1 = vand.u32 2147483648, %v243_v55  ;;  %v254_v3 = vand.u32 2147483647, %v243_v55 }
 0x1bc   :  { %vm250_vm5 = vweird.f32 %v243_v55  ;;  %542 = vmatpush.bf16.msra.mxu2 %v804_v49 }
 0x1bd   :  { %v237_v57 = vmul.f32 %v236_v56, %v218_v36  ;;  %v257_v6 = vor.u32 1.1754944e-38, %v256_v1  ;;  %vm255_vm7 = vcmp.eq.f32.partialorder %v254_v3, 8.507059e+37  ;;  %v802_v56 = vld [vmem:[#allocation6 + $0x20] sm:$0xff] }
 0x1bf   :  { %v239_v59 = vsel %vm238_vm2, %v218_v36, %v237_v57 }
 0x1c0   :  { %v242_v60 = vsel %vm240_vm3, %v241_v58, %v239_v59  ;;  %543 = vmatpush.bf16.msra.mxu2 %v803_v52 }
 0x1c1   :  { %v833_v61 = vpop.eup %832  ;;  %v244_v62 = vadd.f32 1e-06, %v242_v60 }
 0x1c2   :  { %v246_v63 = vmul.f32 %v833_v61, %v243_v55  ;;  %vm251_vm4 = vweird.f32 %v833_v61 }
 0x1c3   :  { %834 = vrcp.f32 %v244_v62  ;;  %vm252_vm6 = vmor %vm250_vm5, %vm251_vm4  ;;  %v271_v13 = vand.u32 2147483648, %v244_v62  ;;  %v269_v15 = vand.u32 2147483647, %v244_v62  ;;  %vm265_vm9 = vweird.f32 %v244_v62 }
 0x1c4   :  { %v247_v0 = vsub.f32 1.0, %v246_v63  ;;  %544 = vmatpush.bf16.msra.mxu2 %v802_v56 }
 0x1c5   :  { %v272_v21 = vor.u32 1.1754944e-38, %v271_v13  ;;  %vm270_vm11 = vcmp.eq.f32.partialorder %v269_v15, 8.507059e+37 }
 0x1c6   :  { %v248_v2 = vmul.f32 %v833_v61, %v247_v0  ;;  %v800_v0 = vld [vmem:[#allocation6 + $0x10] sm:$0xff] }
 0x1c8   :  { %v249_v4 = vadd.f32 %v833_v61, %v248_v2 }
 0x1c9   :  { %v835_v5 = vpop.eup %834 }
 0x1ca   :  { %v253_v7 = vsel %vm252_vm6, %v833_v61, %v249_v4  ;;  %v261_v8 = vmul.f32 %v835_v5, %v244_v62  ;;  %vm266_vm8 = vweird.f32 %v835_v5  ;;  %v801_v61 = vld [vmem:[#allocation6 + $0x18] sm:$0xff] }
 0x1cb   :  { %v258_v9 = vsel %vm255_vm7, %v257_v6, %v253_v7  ;;  %vm267_vm10 = vmor %vm265_vm9, %vm266_vm8  ;;  %545 = vmatpush.bf16.msra.mxu2 %v801_v61  ;;  %v799_v6 = vld [vmem:[#allocation6 + $0x8] sm:$0xff]  ;;  %v806_v61 = vld [vmem:[#allocation7] sm:$0xff] }
 0x1cc   :  { %v262_v10 = vsub.f32 1.0, %v261_v8  ;;  %v275_v11 = vmul.f32 %v258_v9, %v1044_v16 }
 0x1ce   :  { %v263_v14 = vmul.f32 %v835_v5, %v262_v10  ;;  %v281_v18 = vmul.f32 %v821_v12, %v275_v11 }
 0x1cf   :  { %546 = vmatpush.bf16.msra.mxu2 %v800_v0 }
 0x1d0   :  { %v264_v17 = vadd.f32 %v835_v5, %v263_v14  ;;  %v287_v24 = vadd.f32 %v822_v19, %v281_v18 }
 0x1d2   :  { %v268_v22 = vsel %vm267_vm10, %v835_v5, %v264_v17  ;;  %v289_v27 = vmul.f32 0.01, %v287_v24 }
 0x1d3   :  { %v273_v16 = vsel %vm270_vm11, %v272_v21, %v268_v22  ;;  %547 = vmatpush.bf16.msra.mxu2 %v799_v6  ;;  %v813_v21 = vld [vmem:[#allocation7 + $0x38] sm:$0xff] }
 0x1d4   :  { %v276_v23 = vmul.f32 %v273_v16, %v1048_v20  ;;  %v291_v29 = vmax.f32 %v287_v24, %v289_v27  ;;  %624 = vmatpush.bf16.msra.mxu3 %v813_v21  ;;  %v812_v24 = vld [vmem:[#allocation7 + $0x30] sm:$0xff] }
 0x1d6   :  { %v282_v25 = vmul.f32 %v821_v12, %v276_v23  ;;  %v798_v12 = vld [vmem:[#allocation6] sm:$0xff] }
 0x1d7   :  { %548 = vmatpush.bf16.msra.mxu2 %v798_v12 }
 0x1d8   :  { %v288_v26 = vadd.f32 %v822_v19, %v282_v25  ;;  %625 = vmatpush.bf16.msra.mxu3 %v812_v24 }
 0x1da   :  { %v290_v28 = vmul.f32 0.01, %v288_v26 }
 0x1dc   :  { %v292_v30 = vmax.f32 %v288_v26, %v290_v28 }
 0x1de   :  { %v293_v31 = vpack.c.bf16 %v292_v30, %v291_v29  ;;  %v811_v29 = vld [vmem:[#allocation7 + $0x28] sm:$0xff] }
 0x1df   :  { %626 = vmatpush.bf16.msra.mxu3 %v811_v29 }
 0x1e0   :  { %370 = vmatmul.bf16.vlgmr.msra.gmra.mxu1 %v293_v31 }
 0x25d   :  { %v371_v33 = vpop.f32.mrf.mxu1 }
 0x25e   :  { %v372_v34 = vadd.f32 %v823_v32, %v371_v33 }
 0x260   :  { %376 = vadd.xlane.f32.xlu2 %v372_v34 }
 0x265   :  { %v373_v35 = vpop.f32.mrf.mxu1 }
 0x266   :  { %v374_v36 = vadd.f32 %v823_v32, %v373_v35  ;;  %v810_v35 = vld [vmem:[#allocation7 + $0x20] sm:$0xff] }
 0x267   :  { %627 = vmatpush.bf16.msra.mxu3 %v810_v35 }
 0x268   :  { %378 = vadd.xlane.f32.xlu2 %v374_v36 }
 0x2d3   :  { %v377_v20 = vpop.xlane.xlu2 %376 }
 0x2d4   :  { %v380_v37 = vmul.f32 0.03125, %v377_v20 }
 0x2d6   :  { %v1063_v38 = vsub.f32 %v372_v34, %v380_v37  ;;  %v390_v44 = vmul.f32 %v380_v37, %v380_v37 }
 0x2d8   :  { %v384_v39 = vmul.f32 %v1063_v38, %v1063_v38  ;;  %v392_v45 = vmul.f32 96.0, %v390_v44  ;;  %v809_v44 = vld [vmem:[#allocation7 + $0x18] sm:$0xff] }
 0x2d9   :  { %628 = vmatpush.bf16.msra.mxu3 %v809_v44 }
 0x2da   :  { %386 = vadd.xlane.f32.xlu0 %v384_v39  ;;  %v824_v39 = vld [vmem:[%s1098_s7] ss:$0 sm:$0xff] }
 0x2db   :  { %v379_v40 = vpop.xlane.xlu2 %378 }
 0x2dc   :  { %v381_v41 = vmul.f32 0.03125, %v379_v40 }
 0x2de   :  { %v1067_v42 = vsub.f32 %v374_v36, %v381_v41  ;;  %v391_v50 = vmul.f32 %v381_v41, %v381_v41 }
 0x2e0   :  { %v385_v43 = vmul.f32 %v1067_v42, %v1067_v42  ;;  %v393_v53 = vmul.f32 96.0, %v391_v50 }
 0x2e2   :  { %388 = vadd.xlane.f32.xlu1 %v385_v43 }
 0x34d   :  { %v387_v46 = vpop.xlane.xlu0 %386 }
 0x34e   :  { %v394_v48 = vsub.f32 %v387_v46, %v392_v45 }
 0x350   :  { %v396_v51 = vmul.f32 0.032258064, %v394_v48 }
 0x352   :  { %836 = vrsqrt.f32 %v396_v51  ;;  %vm405_vm12 = vcmp.eq.f32.partialorder %v396_v51, inf  ;;  %v408_v7 = vand.u32 2147483648, %v396_v51  ;;  %vm407_vm13 = vcmp.eq.f32.partialorder %v396_v51, 0.0 }
 0x355   :  { %v389_v54 = vpop.xlane.xlu1 %388 }
 0x356   :  { %v395_v55 = vsub.f32 %v389_v54, %v393_v53 }
 0x358   :  { %v837_v57 = vpop.eup %836  ;;  %v397_v58 = vmul.f32 0.032258064, %v395_v55 }
 0x359   :  { %v399_v59 = vmul.f32 %v837_v57, %v396_v51 }
 0x35a   :  { %838 = vrsqrt.f32 %v397_v58  ;;  %vm417_vm14 = vcmp.eq.f32.partialorder %v397_v58, inf  ;;  %v420_v17 = vand.u32 2147483648, %v397_v58  ;;  %vm419_vm15 = vcmp.eq.f32.partialorder %v397_v58, 0.0 }
 0x35b   :  { %v400_v60 = vmul.f32 %v837_v57, %v399_v59  ;;  %v808_v59 = vld [vmem:[#allocation7 + $0x10] sm:$0xff] }
 0x35c   :  { %629 = vmatpush.bf16.msra.mxu3 %v808_v59 }
 0x35d   :  { %v401_v62 = vmul.f32 0.5, %v400_v60  ;;  %v807_v60 = vld [vmem:[#allocation7 + $0x8] sm:$0xff] }
 0x35f   :  { %v402_v63 = vsub.f32 1.5, %v401_v62 }
 0x360   :  { %v839_v1 = vpop.eup %838  ;;  %630 = vmatpush.bf16.msra.mxu3 %v807_v60 }
 0x361   :  { %v403_v2 = vmul.f32 %v837_v57, %v402_v63  ;;  %v411_v3 = vmul.f32 %v839_v1, %v397_v58 }
 0x363   :  { %v404_v4 = vmul.f32 %v403_v2, %v396_v51  ;;  %v412_v5 = vmul.f32 %v839_v1, %v411_v3  ;;  %v827_v3 = vld [vmem:[%s1103_s12] ss:$0 sm:$0xff] }
 0x364   :  { %631 = vmatpush.bf16.msra.mxu3 %v806_v61 }
 0x365   :  { %v406_v8 = vsel %vm405_vm12, %v396_v51, %v404_v4  ;;  %v413_v9 = vmul.f32 0.5, %v412_v5 }
 0x366   :  { %v409_v10 = vsel %vm407_vm13, %v408_v7, %v406_v8 }
 0x367   :  { %v414_v11 = vsub.f32 1.5, %v413_v9  ;;  %v422_v13 = vadd.f32 1e-06, %v409_v10 }
 0x369   :  { %v415_v14 = vmul.f32 %v839_v1, %v414_v11  ;;  %840 = vrcp.f32 %v422_v13  ;;  %v435_v26 = vand.u32 2147483648, %v422_v13  ;;  %v433_v28 = vand.u32 2147483647, %v422_v13 }
 0x36a   :  { %vm429_vm1 = vweird.f32 %v422_v13 }
 0x36b   :  { %v416_v15 = vmul.f32 %v415_v14, %v397_v58  ;;  %v436_v32 = vor.u32 1.1754944e-38, %v435_v26  ;;  %vm434_vm3 = vcmp.eq.f32.partialorder %v433_v28, 8.507059e+37 }
 0x36d   :  { %v418_v18 = vsel %vm417_vm14, %v397_v58, %v416_v15 }
 0x36e   :  { %v421_v19 = vsel %vm419_vm15, %v420_v17, %v418_v18 }
 0x36f   :  { %v841_v22 = vpop.eup %840  ;;  %v423_v16 = vadd.f32 1e-06, %v421_v19 }
 0x370   :  { %v425_v23 = vmul.f32 %v841_v22, %v422_v13  ;;  %vm430_vm0 = vweird.f32 %v841_v22 }
 0x371   :  { %842 = vrcp.f32 %v423_v16  ;;  %vm431_vm2 = vmor %vm429_vm1, %vm430_vm0  ;;  %v450_v40 = vand.u32 2147483648, %v423_v16  ;;  %v448_v43 = vand.u32 2147483647, %v423_v16  ;;  %vm444_vm5 = vweird.f32 %v423_v16 }
 0x372   :  { %v426_v25 = vsub.f32 1.0, %v425_v23 }
 0x373   :  { %v451_v48 = vor.u32 1.1754944e-38, %v450_v40  ;;  %vm449_vm7 = vcmp.eq.f32.partialorder %v448_v43, 8.507059e+37 }
 0x374   :  { %v427_v27 = vmul.f32 %v841_v22, %v426_v25 }
 0x376   :  { %v428_v30 = vadd.f32 %v841_v22, %v427_v27 }
 0x377   :  { %v843_v31 = vpop.eup %842 }
 0x378   :  { %v432_v33 = vsel %vm431_vm2, %v841_v22, %v428_v30  ;;  %v440_v34 = vmul.f32 %v843_v31, %v423_v16  ;;  %vm445_vm4 = vweird.f32 %v843_v31 }
 0x379   :  { %v437_v36 = vsel %vm434_vm3, %v436_v32, %v432_v33  ;;  %vm446_vm6 = vmor %vm444_vm5, %vm445_vm4 }
 0x37a   :  { %v441_v20 = vsub.f32 1.0, %v440_v34  ;;  %v454_v37 = vmul.f32 %v437_v36, %v1063_v38 }
 0x37c   :  { %v442_v41 = vmul.f32 %v843_v31, %v441_v20  ;;  %v460_v46 = vmul.f32 %v824_v39, %v454_v37 }
 0x37e   :  { %v443_v45 = vadd.f32 %v843_v31, %v442_v41  ;;  %v466_v51 = vadd.f32 %v825_v47, %v460_v46 }
 0x380   :  { %v447_v38 = vsel %vm446_vm6, %v843_v31, %v443_v45  ;;  %v468_v54 = vmul.f32 0.01, %v466_v51 }
 0x381   :  { %v452_v49 = vsel %vm449_vm7, %v451_v48, %v447_v38 }
 0x382   :  { %v455_v50 = vmul.f32 %v452_v49, %v1067_v42  ;;  %v470_v56 = vmax.f32 %v466_v51, %v468_v54  ;;  %v826_v42 = vld [vmem:[%s1101_s10] ss:$0 sm:$0xff] }
 0x384   :  { %v461_v52 = vmul.f32 %v824_v39, %v455_v50 }
 0x386   :  { %v467_v53 = vadd.f32 %v825_v47, %v461_v52 }
 0x388   :  { %v469_v55 = vmul.f32 0.01, %v467_v53 }
 0x38a   :  { %v471_v57 = vmax.f32 %v467_v53, %v469_v55 }
 0x38c   :  { %v472_v58 = vpack.c.bf16 %v471_v57, %v470_v56 }
 0x38e   :  { %549 = vmatmul.bf16.vlgmr.msra.gmra.mxu2 %v472_v58 }
 0x411   :  { %v550_v62 = vpop.f32.mrf.mxu2 }
 0x412   :  { %v551_v0 = vadd.f32 %v826_v42, %v550_v62 }
 0x419   :  { %v552_v63 = vpop.f32.mrf.mxu2 }
 0x41a   :  { %v553_v1 = vadd.f32 %v826_v42, %v552_v63 }
 0x41c   :  { %v555_v2 = vpack.c.bf16 %v553_v1, %v551_v0 }
 0x41e   :  { %632 = vmatmul.bf16.vlgmr.msra.gmra.mxu3 %v555_v2 }
 0x4a1   :  { %v633_v4 = vpop.f32.mrf.mxu3 }
 0x4a2   :  { %v634_v5 = vadd.f32 %v827_v3, %v633_v4 }
 0x4a4   :  { %844 = vtanh.f32 %v634_v5 }
 0x4a9   :  { %v635_v6 = vpop.f32.mrf.mxu3 }
 0x4aa   :  { %v845_v7 = vpop.eup %844  ;;  %v636_v8 = vadd.f32 %v827_v3, %v635_v6 }
 0x4ab   :  { %640 = vst [vmem:[%s1104_s13] sm:$0xff] %v845_v7 }
 0x4ac   :  { %846 = vtanh.f32 %v636_v8 }
 0x4b2   :  { %v847_v9 = vpop.eup %846 }
 0x4b3   :  { %641 = vst [vmem:[%s1104_s13 + $0x8] sm:$0xff] %v847_v9 }
 0x4b4   :  { %646 = vsyncpa [#allocation3], 1 }
 0x4b5   :  { %647 = vsyncpa [#allocation5], 1 }
 0x4b6   :  { %648 = vsyncpa [#allocation8], 1 }

</bundles_post_ra>
